<compile_context>
chip_gen: v6e
topology: v6e:2x2x1
jax: 0.10.0
libtpu: 0.0.40
codegen_flags: <defaults>
</compile_context>

<pallas_src>
import functools
import math

import jax
import jax.numpy as jnp
import numpy as np
from jax.experimental import pallas as pl
from jax.experimental.pallas import tpu as pltpu


# --------------------------------------------------------------------------
# Kernels
# --------------------------------------------------------------------------
def _mha_attn_kernel(x_ref, wq_ref, bq_ref, wk_ref, bk_ref, wv_ref, bv_ref,
                     wo_ref, bo_ref, out_ref, *, h, q, v, compute_dtype):
    """Unmasked softmax attention for a block of TB batch elements."""
    cdt = compute_dtype
    exact = jnp.dtype(cdt) == jnp.dtype(jnp.float32)
    TB, S, D = x_ref.shape
    HQ, HV = h * q, h * v

    # ---- Fused projections (one lane-dense matmul each, N = h*q) ----------
    x2 = x_ref[...].reshape(TB * S, D).astype(cdt)           # merge batch+seq
    wq = wq_ref[...].astype(cdt)
    wk = wk_ref[...].astype(cdt)
    wv = wv_ref[...].astype(cdt)
    wo = wo_ref[...].astype(cdt)
    bq = bq_ref[...]
    bk = bk_ref[...]
    bv = bv_ref[...]
    bo = bo_ref[...]

    Q = jnp.dot(x2, wq, preferred_element_type=jnp.float32) + bq   # [TB*S, HQ]
    K = jnp.dot(x2, wk, preferred_element_type=jnp.float32) + bk   # [TB*S, HQ]
    V = jnp.dot(x2, wv, preferred_element_type=jnp.float32) + bv   # [TB*S, HV]
    Q = Q.reshape(TB, S, HQ)
    K = K.reshape(TB, S, HQ)
    V = V.reshape(TB, S, HV)

    # ---- Per-batch-element attention (static unroll over the block) -------
    for b in range(TB):
        # One cheap [S, 32] -> [32, S] minor transpose each; the [h, *, S]
        # split is a pure sublane regrouping.  K/V are therefore already
        # "pre-transposed" for the batched matmuls below.
        Qh = jnp.swapaxes(Q[b].T.reshape(h, q, S), 1, 2).astype(cdt)  # [h,S,q]
        KT = K[b].T.reshape(h, q, S).astype(cdt)                      # [h,q,S]
        VT = V[b].T.reshape(h, v, S).astype(cdt)                      # [h,v,S]

        # Scores per head (no 1/sqrt(q) scaling -- faithful to the module).
        score = jnp.einsum('hsq,hqt->hst', Qh, KT,
                           preferred_element_type=jnp.float32)        # [h,S,S]
        m = jnp.max(score, axis=-1, keepdims=True)
        e = jnp.exp(score - m)
        den = jnp.sum(e, axis=-1, keepdims=True)
        if exact:
            p = e / den
        else:
            p = e * pl.reciprocal(den, approx=True)

        # Context, produced head-major so the head concat is a free reshape.
        ctxT = jnp.einsum('hvt,hst->hvs', VT, p.astype(cdt),
                          preferred_element_type=jnp.float32)         # [h,v,S]

        # Output projection with the head-sum folded into the MXU contraction
        # (K = h*v); wo stays in its original [h*v, D] layout.
        ctx2 = ctxT.reshape(HV, S).T.astype(cdt)                      # [S, h*v]
        out = jnp.dot(ctx2, wo, preferred_element_type=jnp.float32) + bo
        out_ref[b] = out.astype(out_ref.dtype)


def _mha_uniform_kernel(x_ref, wv_ref, bv_ref, wo_ref, bo_ref, out_ref, *,
                        compute_dtype):
    """Masked 'train' path: tril(zeros) forces all scores to 0 => uniform
    attention.  By linearity this is mean(x over seq) @ W_v @ W_o (+ biases),
    identical for every sequence position."""
    cdt = compute_dtype
    TB, S, D = x_ref.shape
    mean_x = jnp.mean(x_ref[...], axis=1)                             # [TB, D]
    mv = jnp.dot(mean_x.astype(cdt), wv_ref[...].astype(cdt),
                 preferred_element_type=jnp.float32) + bv_ref[...]    # [TB, HV]
    row = jnp.dot(mv.astype(cdt), wo_ref[...].astype(cdt),
                  preferred_element_type=jnp.float32) + bo_ref[...]   # [TB, D]
    for b in range(TB):
        out_ref[b] = jnp.broadcast_to(row[b:b + 1, :], (S, D)).astype(
            out_ref.dtype)


# --------------------------------------------------------------------------
# Wrapper
# --------------------------------------------------------------------------
def _pick_block_b(B, S, D, itemsize=4):
    """Largest divisor of B whose x-block stays <= ~256 KiB, while keeping at
    least two grid steps when B >= 2 (so both v7x TensorCores get work)."""
    target = 256 * 1024
    best = 1
    for tb in range(1, B + 1):
        if B % tb:
            continue
        if B >= 2 and B // tb < 2:
            continue
        if tb * S * D * itemsize <= target:
            best = tb
    return best


def mutil_head_attention(x, params, *, h, q, v, mask=True, stage='train',
                         compute_dtype=jnp.bfloat16, block_b=None):
    """x: [B, S, d_model] float32.  params: dict of pre-transposed weights."""
    B, S, D = x.shape
    apply_mask = bool(mask and stage == 'train')
    TB = block_b if block_b is not None else _pick_block_b(B, S, D)
    assert B % TB == 0, (B, TB)

    x_spec = pl.BlockSpec((TB, S, D), lambda b: (b, 0, 0))
    out_spec = pl.BlockSpec((TB, S, D), lambda b: (b, 0, 0))

    def full_spec(a):
        # Whole array every grid step; constant index -> stays VMEM-resident.
        return pl.BlockSpec(a.shape, lambda b: (0,) * a.ndim)

    out_shape = jax.ShapeDtypeStruct((B, S, D), jnp.float32)
    cparams = pltpu.CompilerParams(
        dimension_semantics=("parallel",),
        vmem_limit_bytes=32 * 1024 * 1024,
    )

    if apply_mask:
        wv_, bv_ = params['wv'], params['bv']
        wo_, bo_ = params['wo'], params['bo']
        kernel = functools.partial(_mha_uniform_kernel,
                                   compute_dtype=compute_dtype)
        return pl.pallas_call(
            kernel,
            out_shape=out_shape,
            grid=(B // TB,),
            in_specs=[x_spec, full_spec(wv_), full_spec(bv_),
                      full_spec(wo_), full_spec(bo_)],
            out_specs=out_spec,
            compiler_params=cparams,
        )(x, wv_, bv_, wo_, bo_)

    # Unmasked path: weights are passed in their original lane-dense layouts
    # ([D, h*q], [1, h*q], [h*v, D], [1, D]) -- no wrapper reshapes/transposes.
    weights = (params['wq'], params['bq'], params['wk'], params['bk'],
               params['wv'], params['bv'], params['wo'], params['bo'])
    kernel = functools.partial(_mha_attn_kernel, h=h, q=q, v=v,
                               compute_dtype=compute_dtype)
    return pl.pallas_call(
        kernel,
        out_shape=out_shape,
        grid=(B // TB,),
        in_specs=[x_spec] + [full_spec(a) for a in weights],
        out_specs=out_spec,
        compiler_params=cparams,
    )(x, *weights)


# --------------------------------------------------------------------------
# Plain-JAX reference mirroring the PyTorch forward exactly (f32).
# --------------------------------------------------------------------------
def _reference(x, params, *, h, q, v, mask=True, stage='train'):
    Q = x @ params['wq'] + params['bq'][0]
    K = x @ params['wk'] + params['bk'][0]
    V = x @ params['wv'] + params['bv'][0]
    Qh = jnp.concatenate(jnp.split(Q, h, axis=-1), axis=0)   # [h*B, S, q]
    Kh = jnp.concatenate(jnp.split(K, h, axis=-1), axis=0)
    Vh = jnp.concatenate(jnp.split(V, h, axis=-1), axis=0)
    score = jnp.einsum('nsq,ntq->nst', Qh, Kh)
    if mask and stage == 'train':
        score = jnp.zeros_like(score)   # where(tril(zeros) > 0, score, 0)
    score = jax.nn.softmax(score, axis=-1)
    attn = jnp.einsum('nst,ntv->nsv', score, Vh)
    attn = jnp.concatenate(jnp.split(attn, h, axis=0), axis=-1)  # [B, S, h*v]
    return attn @ params['wo'] + params['bo'][0]


def _init_linear(kw, kb, fan_in, fan_out):
    # torch.nn.Linear default init: U(-1/sqrt(fan_in), 1/sqrt(fan_in))
    bound = 1.0 / math.sqrt(fan_in)
    W = jax.random.uniform(kw, (fan_in, fan_out), jnp.float32, -bound, bound)
    b = jax.random.uniform(kb, (1, fan_out), jnp.float32, -bound, bound)
    return W, b


if __name__ == "__main__":
    d_model, q_dim, v_dim, h = 32, 8, 8, 4
    B, S = 2, 8

    key = jax.random.PRNGKey(0)
    keys = jax.random.split(key, 9)
    wq, bq = _init_linear(keys[0], keys[1], d_model, q_dim * h)
    wk, bk = _init_linear(keys[2], keys[3], d_model, q_dim * h)
    wv, bv = _init_linear(keys[4], keys[5], d_model, v_dim * h)
    wo, bo = _init_linear(keys[6], keys[7], v_dim * h, d_model)
    params = dict(wq=wq, bq=bq, wk=wk, bk=bk, wv=wv, bv=bv, wo=wo, bo=bo)

    x = jax.random.normal(keys[8], (B, S, d_model), jnp.float32)

    # --- exact-precision validation (f32 operands, exact softmax divide) ---
    for stage in ('train', 'test'):
        out = mutil_head_attention(x, params, h=h, q=q_dim, v=v_dim,
                                   mask=True, stage=stage,
                                   compute_dtype=jnp.float32)
        jax.block_until_ready(out)
        ref = _reference(x, params, h=h, q=q_dim, v=v_dim, mask=True,
                         stage=stage)
        np.testing.assert_allclose(np.asarray(out), np.asarray(ref),
                                   rtol=5e-3, atol=5e-3)

    # --- default fast path (bf16 MXU operands, f32 accumulation) -----------
    for stage in ('train', 'test'):
        out = mutil_head_attention(x, params, h=h, q=q_dim, v=v_dim,
                                   mask=True, stage=stage)   # bf16 default
        jax.block_until_ready(out)
        ref = _reference(x, params, h=h, q=q_dim, v=v_dim, mask=True,
                         stage=stage)
        np.testing.assert_allclose(np.asarray(out), np.asarray(ref),
                                   rtol=5e-2, atol=5e-2)

    print("KERNEL_OK")
</pallas_src>

<mosaic_0001>
module attributes {stable_mosaic.version = 11 : i64} {
  func.func @_mha_uniform_kernel(%arg0: i32, %arg1: memref<1x8x32xf32, #tpu.memory_space<vmem>>, %arg2: memref<32x32xf32, #tpu.memory_space<vmem>>, %arg3: memref<1x32xf32, #tpu.memory_space<vmem>>, %arg4: memref<32x32xf32, #tpu.memory_space<vmem>>, %arg5: memref<1x32xf32, #tpu.memory_space<vmem>>, %arg6: memref<1x8x32xf32, #tpu.memory_space<vmem>>) attributes {dimension_semantics = [#tpu.dimension_semantics<parallel>], iteration_bounds = array<i64: 2>, scalar_prefetch = 0 : i64, scratch_operands = 0 : i64, tpu.core_type = #tpu.core_type<tc>, window_params = [{transform_indices = @transform_0, window_bounds = array<i64: 1, 8, 32>}, {pipeline_mode = #tpu.pipeline_mode<synchronous>, transform_indices = @transform_1, window_bounds = array<i64: 32, 32>}, {pipeline_mode = #tpu.pipeline_mode<synchronous>, transform_indices = @transform_2, window_bounds = array<i64: 1, 32>}, {pipeline_mode = #tpu.pipeline_mode<synchronous>, transform_indices = @transform_3, window_bounds = array<i64: 32, 32>}, {pipeline_mode = #tpu.pipeline_mode<synchronous>, transform_indices = @transform_4, window_bounds = array<i64: 1, 32>}, {transform_indices = @transform_5, window_bounds = array<i64: 1, 8, 32>}]} {
    %c0 = arith.constant 0 : index
    %c0_0 = arith.constant 0 : index
    %c0_1 = arith.constant 0 : index
    %0 = vector.load %arg1[%c0, %c0_0, %c0_1] : memref<1x8x32xf32, #tpu.memory_space<vmem>>, vector<1x8x32xf32>
    %cst = arith.constant dense<0.000000e+00> : vector<1x32xf32>
    %1 = vector.multi_reduction <add>, %0, %cst [1] : vector<1x8x32xf32> to vector<1x32xf32>
    %cst_2 = arith.constant 8.000000e+00 : f32
    %2 = vector.broadcast %cst_2 : f32 to vector<1x32xf32>
    %3 = arith.divf %1, %2 : vector<1x32xf32>
    %c0_3 = arith.constant 0 : index
    %c0_4 = arith.constant 0 : index
    %4 = vector.load %arg2[%c0_3, %c0_4] : memref<32x32xf32, #tpu.memory_space<vmem>>, vector<32x32xf32>
    %cst_5 = arith.constant dense<0.000000e+00> : vector<1x32xf32>
    %5 = tpu.matmul %3, %4, %cst_5 {dimension_numbers = #tpu.dot_dimension_numbers<[1], [0], [0], [1], [0, 0, 1, 1], [], []>} : vector<1x32xf32>, vector<32x32xf32>, vector<1x32xf32> -> vector<1x32xf32>
    %c0_6 = arith.constant 0 : index
    %c0_7 = arith.constant 0 : index
    %6 = vector.load %arg3[%c0_6, %c0_7] : memref<1x32xf32, #tpu.memory_space<vmem>>, vector<1x32xf32>
    %7 = arith.addf %5, %6 : vector<1x32xf32>
    %c0_8 = arith.constant 0 : index
    %c0_9 = arith.constant 0 : index
    %8 = vector.load %arg4[%c0_8, %c0_9] : memref<32x32xf32, #tpu.memory_space<vmem>>, vector<32x32xf32>
    %cst_10 = arith.constant dense<0.000000e+00> : vector<1x32xf32>
    %9 = tpu.matmul %7, %8, %cst_10 {dimension_numbers = #tpu.dot_dimension_numbers<[1], [0], [0], [1], [0, 0, 1, 1], [], []>} : vector<1x32xf32>, vector<32x32xf32>, vector<1x32xf32> -> vector<1x32xf32>
    %c0_11 = arith.constant 0 : index
    %c0_12 = arith.constant 0 : index
    %10 = vector.load %arg5[%c0_11, %c0_12] : memref<1x32xf32, #tpu.memory_space<vmem>>, vector<1x32xf32>
    %11 = arith.addf %9, %10 : vector<1x32xf32>
    %12 = vector.shape_cast %11 : vector<1x32xf32> to vector<1x32xf32>
    %13 = vector.broadcast %12 : vector<1x32xf32> to vector<8x32xf32>
    %c0_13 = arith.constant 0 : index
    %c0_14 = arith.constant 0 : index
    %c0_15 = arith.constant 0 : index
    %14 = vector.load %arg6[%c0_13, %c0_14, %c0_15] : memref<1x8x32xf32, #tpu.memory_space<vmem>>, vector<1x8x32xf32>
    %15 = vector.shape_cast %14 : vector<1x8x32xf32> to vector<8x32xf32>
    %16 = vector.shape_cast %13 : vector<8x32xf32> to vector<1x8x32xf32>
    tpu.vector_store %arg6[%c0_13, %c0_14, %c0_15], %16 {strides = array<i32>} : memref<1x8x32xf32, #tpu.memory_space<vmem>>, vector<1x8x32xf32>,
    return
  }
  func.func @transform_0(%arg0: i32) -> (i32, i32, i32) {
    %c0_i32 = arith.constant 0 : i32
    %c0_i32_0 = arith.constant 0 : i32
    %c0_i32_1 = arith.constant 0 : i32
    return %arg0, %c0_i32, %c0_i32_0 : i32, i32, i32
  }
  func.func @transform_1(%arg0: i32) -> (i32, i32) {
    %c0_i32 = arith.constant 0 : i32
    %c0_i32_0 = arith.constant 0 : i32
    %c0_i32_1 = arith.constant 0 : i32
    return %c0_i32, %c0_i32_0 : i32, i32
  }
  func.func @transform_2(%arg0: i32) -> (i32, i32) {
    %c0_i32 = arith.constant 0 : i32
    %c0_i32_0 = arith.constant 0 : i32
    %c0_i32_1 = arith.constant 0 : i32
    return %c0_i32, %c0_i32_0 : i32, i32
  }
  func.func @transform_3(%arg0: i32) -> (i32, i32) {
    %c0_i32 = arith.constant 0 : i32
    %c0_i32_0 = arith.constant 0 : i32
    %c0_i32_1 = arith.constant 0 : i32
    return %c0_i32, %c0_i32_0 : i32, i32
  }
  func.func @transform_4(%arg0: i32) -> (i32, i32) {
    %c0_i32 = arith.constant 0 : i32
    %c0_i32_0 = arith.constant 0 : i32
    %c0_i32_1 = arith.constant 0 : i32
    return %c0_i32, %c0_i32_0 : i32, i32
  }
  func.func @transform_5(%arg0: i32) -> (i32, i32, i32) {
    %c0_i32 = arith.constant 0 : i32
    %c0_i32_0 = arith.constant 0 : i32
    %c0_i32_1 = arith.constant 0 : i32
    return %arg0, %c0_i32, %c0_i32_0 : i32, i32, i32
  }
}

</mosaic_0001>

<bundles_post_ra>
// kernel: tpu_custom_call.1
= control target key start
LH: loop header
LB: loop body
LE: loop exit
PB: predicated region body
PF: predicated region fallthrough
CT: control target
= control target key end

     0   :  { %10 = vsyncpa [#allocation3], 0  ;;  %s1032_s0 = inlined_call_operand.hbm [shape: f32[2,8,32], index: 0, kind: input, shape index: {}]   ;;  %s1033_s1 = inlined_call_operand.hbm [shape: f32[32,32], index: 1, kind: input, shape index: {}]   ;;  %s1034_s2 = inlined_call_operand.vmem [shape: f32[1,32], index: 2, kind: input, shape index: {}]   ;;  %s1035_s3 = inlined_call_operand.hbm [shape: f32[32,32], index: 3, kind: input, shape index: {}]   ;;  %s1036_s4 = inlined_call_operand.vmem [shape: f32[1,32], index: 4, kind: input, shape index: {}]   ;;  %s1037_s5 = inlined_call_operand.hbm [shape: f32[2,8,32], index: 5, kind: output, shape index: {}]  }
   0x1   :  { %12 = vsyncpa [#allocation3 + $0x1], 0 }
   0x2   :  { %13 = vsyncpa [#allocation6], 0 }
   0x3   :  { %14 = vsyncpa [#allocation4], 0 }
   0x4   :  { %16 = vsyncpa [#allocation4 + $0x1], 0  ;;  %s853_s18 = smov 0   ;;  %s855_s19 = smov 0  }
   0x5   :  { %s857_s20 = smov 0   ;;  %s859_s21 = smov 0  }
   0x6 LB: > { %s874_s22 = sadd.s32 4294967295, %s813_s21   ;;  %s544_s23 = sadd.s32 4294967294, %s813_s21   ;;  %s813_s21 = sphi %s859_s21, %s1059_s21   ;;  %s809_s20 = sphi %s857_s20, %s1058_s20   ;;  %s805_s19 = sphi %s855_s19, %s1057_s19   ;;  %s801_s18 = sphi %s853_s18, %s1056_s18  }
   0x7   : > { %p42_p0 = scmp.ne.s32.totalorder %s805_s19, %s801_s18  ;;  %p1038_p1 = scmp.eq.s32.totalorder %s874_s22, 0 }
   0x8   : > { %p156_p3 = scmp.eq.s32.totalorder %s544_s23, 1  ;;  %p545_p5 = scmp.ge.s32.totalorder %s813_s21, 1 }
   0x9   : > { %p883_p4 = por %p1038_p1, %p42_p0  ;;  %p163_p7 = scmp.lt.s32.totalorder %s813_s21, 3 }
   0xa   : > { %p888_p6 = por %p156_p3, %p42_p0  ;;  %s815_s27 = smov [#allocation5]  }
   0xb   : > { %s1042_s24 = scalar_select %p883_p4, 1, 0 }
   0xc   : > { %s1043_s25 = scalar_select %p888_p6, 1, 0 }
   0xd   : > { %p893_p8 = pnand %p545_p5, %p163_p7  ;;  %s175_s28 = sshll.u32 %s815_s27, 4  ;;  %s176_s28 = int_to_ptr.vmem [resolvable:$true] %s175_s28 }
   0xe   : > { %s816_s30 = smov [#allocation7]   ;;  %s676_s7 = scalar_lea.vmem %s176_s28, 512 }
   0xf   : > { %s1044_s26 = scalar_select %p893_p8, 1, 0 }
  0x10   : > { %p606_p9 = pneg %p893_p8  ;;  %s191_s6 = sshll.u32 %s816_s30, 4  ;;  %s192_s6 = int_to_ptr.vmem [resolvable:$true] %s191_s6 }
  0x11   : > { %p677_p13 = scmp.ne.s32.totalorder %s176_s28, %s676_s7  ;;  %p684_p5 = scmp.lt.s32.totalorder %s176_s28, %s176_s28 }
  0x12   : > { %p902_p11 = pnand %p606_p9, %p1038_p1  ;;  %p685_p7 = scmp.lt.s32.totalorder %s676_s7, %s676_s7 }
  0x14   : > { %p667_p12 = pneg %p902_p11  ;;  %p686_p10 = por %p685_p7, %p684_p5 }
  0x16   : > { %p679_p0 = pnand %p677_p13, %p667_p12 }
  0x18   : > { %p680_p3 = pneg %p679_p0 }
  0x1a   : > { %p687_p9 = pnand %p686_p10, %p680_p3 }
  0x1c   : > { %690 = shalt.err (!%p687_p9)
}
  0x1d   : > { %s817_s8 = smov 128   ;;  %s818_s9 = smov 8  }
  0x1e   : > { %609 = dma.hbm_to_vmem [thread:$0]  (!%p902_p11), %s1033_s1, 512, %s176_s28, [#allocation6], %s817_s8, %s817_s8, %s818_s9  }
  0x1f   : > { %s702_s12 = scalar_lea.vmem %s192_s6, 512  ;;  %p710_p2 = scmp.lt.s32.totalorder %s192_s6, %s192_s6 }
  0x20   : > { %p703_p1 = scmp.ne.s32.totalorder %s192_s6, %s702_s12  ;;  %p711_p6 = scmp.lt.s32.totalorder %s702_s12, %s702_s12 }
  0x22   : > { %p705_p13 = pnand %p703_p1, %p667_p12  ;;  %p712_p5 = por %p711_p6, %p710_p2 }
  0x24   : > { %p706_p0 = pneg %p705_p13 }
  0x26   : > { %p713_p10 = pnand %p712_p5, %p706_p0 }
  0x28   : > { %716 = shalt.err (!%p713_p10)
}
  0x29   : > { %612 = dma.hbm_to_vmem [thread:$0]  (!%p902_p11), %s1035_s3, 512, %s192_s6, [#allocation6], %s817_s8, %s817_s8, %s818_s9  }
  0x2a   : > { %s925_s15 = sadd.s32 1, %s813_s21   ;;  %s29_s16 = sadd.s32 1, %s809_s20 }
  0x2b   : > { %s26_s17 = ssub.s32 %s813_s21, %s925_s15  ;;  %p36_p1 = scmp.ne.s32.totalorder %s809_s20, %s805_s19 }
  0x2c   : > { %p27_p2 = scmp.eq.s32.totalorder %s26_s17, 0  ;;  %p37_p6 = scmp.eq.s32.totalorder %s813_s21, 0 }
  0x2d   : > { %p1046_p12 = scmp.eq.s32.totalorder %s874_s22, 1  ;;  %p623_p7 = scmp.lt.s32.totalorder %s813_s21, 2 }
  0x2e   : > { %s941_s27 = scalar_select %p27_p2, %s809_s20, %s29_s16  }
  0x2f   : > { %p935_p3 = por %p1046_p12, %p36_p1  ;;  %p38_p9 = por %p37_p6, %p36_p1 }
  0x30   : > { %s208_s28 = sand.u32 1, %s809_s20   ;;  %s550_s30 = sshll.u32 %s813_s21, 7 }
  0x31   : > { %s1047_s23 = scalar_select %p935_p3, 1, 0 }
  0x32   : > { %s549_s29 = sshll.u32 %s208_s28, 3  ;;  %s948_s8 = scalar_lea.hbm %s1032_s0, %s550_s30 }
  0x33   : > { %s212_s9 = scalar_lea.vmem [#allocation2], %s549_s29  ;;  %p950_p11 = pnand %p623_p7, %p38_p9 }
  0x34   : > { %s219_s10 = sshll.u32 %s212_s9, 4  ;;  %s209_s12 = scalar_lea.sflag [#allocation3], %s208_s28  ;;  %s220_s10 = int_to_ptr.vmem [resolvable:$true] %s219_s10 }
  0x35   : > { %s717_s13 = scalar_lea.hbm %s948_s8, 128  ;;  %p719_p0 = pneg %p950_p11 }
  0x36   : > { %p718_p13 = scmp.ne.s32.totalorder %s948_s8, %s717_s13  ;;  %s722_s17 = scalar_lea.hbm %s1032_s0, 256 }
  0x37   : > { %p723_p1 = scmp.lt.s32.totalorder %s948_s8, %s1032_s0  ;;  %p724_p2 = scmp.lt.s32.totalorder %s722_s17, %s717_s13 }
  0x38   : > { %p720_p5 = pnand %p719_p0, %p718_p13 }
  0x39   : > { %p725_p6 = por %p724_p2, %p723_p1 }
  0x3a   : > { %p721_p10 = pneg %p720_p5 }
  0x3c   : > { %p726_p12 = pnand %p725_p6, %p721_p10 }
  0x3e   : > { %729 = shalt.err (!%p726_p12)
}
  0x3f   : > { %s730_s6 = scalar_lea.vmem %s220_s10, 128  ;;  %s819_s28 = smov [#allocation2]  }
  0x40   : > { %p731_p7 = scmp.ne.s32.totalorder %s220_s10, %s730_s6  ;;  %s735_s7 = sshll.u32 %s819_s28, 4  ;;  %s736_s7 = int_to_ptr.vmem [resolvable:$false] %s735_s7 }
  0x41   : > { %s737_s9 = scalar_lea.vmem %s736_s7, 256  ;;  %p738_p13 = scmp.lt.s32.totalorder %s220_s10, %s736_s7 }
  0x42   : > { %p733_p9 = pnand %p731_p7, %p719_p0  ;;  %p739_p5 = scmp.lt.s32.totalorder %s737_s9, %s730_s6 }
  0x44   : > { %p734_p3 = pneg %p733_p9  ;;  %p740_p4 = por %p739_p5, %p738_p13 }
  0x46   : > { %p741_p8 = pnand %p740_p4, %p734_p3 }
  0x48   : > { %744 = shalt.err (!%p741_p8)
}
  0x49   : > { %616 = dma.hbm_to_vmem [thread:$0]  (!%p950_p11), %s948_s8, 128, %s220_s10, %s209_s12  }
  0x4a   : > { %p1049_p10 = scmp.ne.s32.totalorder %s1044_s26, 0 }
  0x4b   : > { %s971_s13 = sand.u32 (!%p1049_p10), 1, %s805_s19   ;;  %p1050_p4 = scmp.ne.s32.totalorder (!%p1049_p10), %s1042_s24, 0 }
  0x4c   : > { %228 = sbr.rel (%p1049_p10) target bundleno = 507 (0x1fb), region = 40  ;;  %s552_s14 = sshll.u32 (!%p1049_p10), %s971_s13, 3 }
  0x4d   : > { %s231_s16 = scalar_lea.sflag (!%p1049_p10), [#allocation3], %s971_s13  ;;  %s234_s17 = scalar_lea.vmem (!%p1049_p10), [#allocation2], %s552_s14 }
  0x51   : > { %788 = dma.done.wait (%p1050_p4), %s231_s16, 128  }
  0x52   : > { %790 = vsyncadd (%p1050_p4), %s231_s16, 4294967168  ;;  %p1051_p8 = scmp.eq.s32.totalorder %s874_s22, 0 }
  0x54   : > { %792 = dma.done.wait (%p1051_p8), [#allocation6], 1024   ;;  %p1052_p3 = pmov %p1051_p8 }
  0x55   : > { %v820_v0 = vmov 0.0   ;;  %vm821_vm0 = vmmov 0   ;;  %vm270_vm1 = vcmask 261120   ;;  %v283_v1 = vld [vmem:[#allocation5 + $0x18] sm:$0xff]  ;;  %v282_v2 = vld [vmem:[#allocation5 + $0x10] sm:$0xff]  ;;  %v281_v5 = vld [vmem:[#allocation5 + $0x8] sm:$0xff]  ;;  %v436_v22 = vlaneseq }
  0x56   : > { %794 = vsyncadd (%p1052_p3), [#allocation6], 4294966272  ;;  %572 = vmatprep.subr.mxu0 %v820_v0  ;;  %580 = vmatprep.mubr.msk.f32.mxu0 %vm821_vm0, %v820_v0  ;;  %v269_v3 = vld [vmem:[%s234_s17] sm:$0xff]  ;;  %v280_v9 = vld [vmem:[#allocation5] sm:$0xff]  ;;  %s559_s11 = sshll.u32 %s874_s22, 7  ;;  %s268_s12 = scalar_lea.vmem [#allocation8], %s552_s14 }
  0x57   : > { %583 = vmatprep.subr.mxu1 %v820_v0  ;;  %591 = vmatprep.mubr.msk.f32.mxu1 %vm821_vm0, %v820_v0  ;;  %v361_v4 = vld [vmem:[#allocation7 + $0x18] sm:$0xff]  ;;  %v271_v6 = vsel %vm270_vm1, %v269_v3, 0.0  ;;  %v360_v7 = vld [vmem:[#allocation7 + $0x10] sm:$0xff]  ;;  %v359_v16 = vld [vmem:[#allocation7 + $0x8] sm:$0xff]  ;;  %v437_v23 = vshrl.u32 %v436_v22, 7  ;;  %s455_s30 = sshll.u32 %s268_s12, 4  ;;  %s453_s28 = scalar_lea.hbm %s1037_s5, %s559_s11  ;;  %s456_s30 = int_to_ptr.vmem [resolvable:$true] %s455_s30 }
  0x58   : > { %573 = vmatpush3.msra.mxu0 %v283_v1  ;;  %584 = vmatpush3.msra.mxu1 %v361_v4  ;;  %v272_v8 = vrot.slane %v271_v6, 4  ;;  %v358_v17 = vld [vmem:[#allocation7] sm:$0xff]  ;;  %v284_v18 = vld [vmem:[%s1034_s2] sm:$0x1]  ;;  %s442_s7 = scalar_lea.sflag [#allocation4], %s971_s13  ;;  %s745_s9 = scalar_lea.vmem %s456_s30, 128 }
  0x59   : > { %574 = vmatprep.subr.mxu0 %v820_v0  ;;  %585 = vmatprep.subr.mxu1 %v820_v0  ;;  %v362_v24 = vld [vmem:[%s1036_s4] sm:$0x1]  ;;  %v438_v25 = vsub.s32 0, %v437_v23  ;;  %p746_p11 = scmp.ne.s32.totalorder %s456_s30, %s745_s9  ;;  %p1053_p0 = scmp.ne.s32.totalorder %s1047_s23, 0 }
  0x5a   : > { %575 = vmatpush3.msra.mxu0 %v282_v2  ;;  %586 = vmatpush3.msra.mxu1 %v360_v7  ;;  %v273_v10 = vadd.f32 %v272_v8, %v271_v6  ;;  %s822_s22 = smov [#allocation8]  }
  0x5b   : > { %576 = vmatprep.subr.mxu0 %v820_v0  ;;  %587 = vmatprep.subr.mxu1 %v820_v0  ;;  %p747_p1 = pnand %p746_p11, %p1053_p0  ;;  %s749_s16 = sshll.u32 %s822_s22, 4  ;;  %s750_s16 = int_to_ptr.vmem [resolvable:$false] %s749_s16 }
  0x5c   : > { %577 = vmatpush3.msra.mxu0 %v281_v5  ;;  %v274_v11 = vrot.slane %v273_v10, 2  ;;  %588 = vmatpush3.msra.mxu1 %v359_v16  ;;  %s751_s14 = scalar_lea.vmem %s750_s16, 256  ;;  %p752_p6 = scmp.lt.s32.totalorder %s456_s30, %s750_s16 }
  0x5d   : > { %578 = vmatprep.subr.mxu0 %v820_v0  ;;  %589 = vmatprep.subr.mxu1 %v820_v0  ;;  %p748_p2 = pneg %p747_p1  ;;  %p753_p12 = scmp.lt.s32.totalorder %s751_s14, %s745_s9 }
  0x5e   : > { %579 = vmatpush3.msra.mxu0 %v280_v9  ;;  %v275_v12 = vadd.f32 %v274_v11, %v273_v10  ;;  %590 = vmatpush3.msra.mxu1 %v358_v17 }
  0x5f   : > { %p754_p7 = por %p753_p12, %p752_p6 }
  0x60   : > { %v276_v13 = vrot.slane %v275_v12, 1 }
  0x61   : > { %p755_p9 = pnand %p754_p7, %p748_p2 }
  0x62   : > { %v277_v14 = vadd.f32 %v276_v13, %v275_v12 }
  0x64   : > { %v279_v15 = vmul.f32 0.125, %v277_v14 }
  0x66   : > { %581 = vmatmul.mubr.msk.f32.vlgmr.msra.gmra.mxu0 %vm270_vm1, %v279_v15 }
 0x126   : > { %v354_v19 = vpop.f32.mrf.mxu0 }
 0x127   : > { %v355_v20 = vadd.f32 %v354_v19, %v284_v18 }
 0x128   : > { %v582_v21 = vpop.f32.mrf.mxu0 }
 0x129   : > { %592 = vmatmul.mubr.msk.f32.vlgmr.msra.gmra.mxu1 %vm270_vm1, %v355_v20 }
 0x1e9   : > { %v432_v26 = vpop.f32.mrf.mxu1 }
 0x1ea   : > { %v433_v27 = vadd.f32 %v432_v26, %v362_v24 }
 0x1eb   : > { %v593_v28 = vpop.f32.mrf.mxu1 }
 0x1ec   : > { %v439_v29 = vrot.slane %v433_v27, %v438_v25 }
 0x1ee   : > { %440 = vst.msk [vmem:[%s268_s12] sm:$0xff] %vm270_vm1, %v439_v29 }
 0x1ef   : > { %758 = shalt.err (!%p755_p9)
}
 0x1f0   : > { %s759_s17 = scalar_lea.hbm %s453_s28, 128  ;;  %s763_s26 = scalar_lea.hbm %s1037_s5, 256 }
 0x1f1   : > { %p760_p13 = scmp.ne.s32.totalorder %s453_s28, %s759_s17  ;;  %p764_p4 = scmp.lt.s32.totalorder %s453_s28, %s1037_s5 }
 0x1f2   : > { %p765_p8 = scmp.lt.s32.totalorder %s763_s26, %s759_s17 }
 0x1f3   : > { %p761_p5 = pnand %p760_p13, %p1053_p0 }
 0x1f4   : > { %p766_p3 = por %p765_p8, %p764_p4 }
 0x1f5   : > { %p762_p10 = pneg %p761_p5 }
 0x1f7   : > { %p767_p11 = pnand %p766_p3, %p762_p10 }
 0x1f9   : > { %770 = shalt.err (!%p767_p11)
}
 0x1fa   : > { %604 = dma.vmem_to_hbm [thread:$0]  (%p1053_p0), %s456_s30, 128, %s453_s28, %s442_s7  }
 0x1fb PF: > { %s467_s11 = sand.u32 1, %s801_s18   ;;  %p1054_p1 = scmp.ne.s32.totalorder %s1043_s25, 0 }
 0x1fc   : > { %p1055_p2 = scmp.ge.s32.totalorder %s813_s21, 2  ;;  %s468_s12 = scalar_lea.sflag [#allocation4], %s467_s11 }
 0x1fe   : > { %p618_p6 = pnand %p1055_p2, %p1054_p1 }
 0x200   : > { %p619_p12 = pneg %p618_p6 }
 0x202   : > { %796 = dma.done.wait (%p619_p12), %s468_s12, 128  }
 0x203   : > { %798 = vsyncadd (%p619_p12), %s468_s12, 4294967168  ;;  %p19_p7 = scmp.ge.s32.totalorder %s925_s15, 4   ;;  %s1056_s18 = smov %s805_s19 }
 0x204   : > { %s1057_s19 = smov %s809_s20  ;;  %s1058_s20 = smov %s941_s27 }
 0x205   : > { %s1059_s21 = smov %s925_s15  ;;  %21 = sbr.rel (!%p19_p7) target bundleno = 6 (0x6), region = 93 }
 0x20a   :  { %473 = vsyncpa [#allocation3], 1 }
 0x20b   :  { %475 = vsyncpa [#allocation3 + $0x1], 1 }
 0x20c   :  { %476 = vsyncpa [#allocation6], 1 }
 0x20d   :  { %477 = vsyncpa [#allocation4], 1 }
 0x20e   :  { %479 = vsyncpa [#allocation4 + $0x1], 1 }

</bundles_post_ra>
